<compile_context>
chip_gen: v5e
topology: v5e:2x2
jax: 0.10.0
libtpu: 0.0.40
codegen_flags: <defaults>
</compile_context>

<pallas_src>
import math

import numpy as np
import jax
import jax.numpy as jnp
from jax.experimental import pallas as pl
from jax.experimental.pallas import tpu as pltpu


# ----------------------------- Pallas kernel --------------------------------

def _fused_gcn_kernel(a_ref, feat_ref, w_ref, o_ref, acc_ref):
    """out[row_tile] = relu((A[row_tile, :] @ feat) @ W), K-tiled over columns of A."""
    k = pl.program_id(1)

    @pl.when(k == 0)
    def _():
        acc_ref[...] = jnp.zeros_like(acc_ref)

    # Accumulate the neighborhood aggregation of the *raw* features:
    # acc += A[row_tile, k_tile] @ feat[k_tile, :]
    acc_ref[...] += jnp.dot(a_ref[...], feat_ref[...],
                            preferred_element_type=jnp.float32)

    @pl.when(k == pl.num_programs(1) - 1)
    def _():
        # Epilogue: tiny projection through W, then activation.
        h = jnp.dot(acc_ref[...], w_ref[...],
                    preferred_element_type=jnp.float32)
        o_ref[...] = jnp.maximum(h, 0.0)


# ------------------------------ wrapper --------------------------------------

def _round_up(x, m):
    return ((x + m - 1) // m) * m


def simple_conv(adj_norm, feat, W, *, tile_m=256, tile_k=512):
    """Full SimpleConv.forward: relu(A_norm @ (feat @ W)), computed as
    relu((A_norm @ feat) @ W) inside one fused Pallas kernel."""
    N, Fin = feat.shape
    Fout = W.shape[1]
    assert adj_norm.shape == (N, N)

    # MXU-friendly tiles (multiples of 128), clamped to the (padded) problem size.
    n_pad128 = _round_up(N, 128)
    tile_m = min(tile_m, n_pad128)
    tile_k = min(tile_k, n_pad128)

    # Pad rows and columns of A independently so each tiling divides evenly.
    Nr = _round_up(N, tile_m)   # padded row count (output rows)
    Nc = _round_up(N, tile_k)   # padded column count (reduction length)
    if Nr != N or Nc != N:
        adj_norm = jnp.pad(adj_norm, ((0, Nr - N), (0, Nc - N)))
        feat = jnp.pad(feat, ((0, Nc - N), (0, 0)))

    grid = (Nr // tile_m, Nc // tile_k)

    out = pl.pallas_call(
        _fused_gcn_kernel,
        out_shape=jax.ShapeDtypeStruct((Nr, Fout), jnp.float32),
        grid_spec=pltpu.PrefetchScalarGridSpec(
            num_scalar_prefetch=0,
            grid=grid,
            in_specs=[
                # A[row_tile, k_tile]
                pl.BlockSpec((tile_m, tile_k), lambda i, k: (i, k)),
                # feat[k_tile, :]
                pl.BlockSpec((tile_k, Fin), lambda i, k: (k, 0)),
                # W (small, resident; same block every step)
                pl.BlockSpec((Fin, Fout), lambda i, k: (0, 0)),
            ],
            # Output block depends only on the row axis -> stays resident across
            # the reduction axis; written once in the epilogue.
            out_specs=pl.BlockSpec((tile_m, Fout), lambda i, k: (i, 0)),
            scratch_shapes=[pltpu.VMEM((tile_m, Fin), jnp.float32)],
        ),
        compiler_params=pltpu.CompilerParams(
            dimension_semantics=("parallel", "arbitrary")),
    )(adj_norm, feat, W)

    return out[:N]
    # TODO(synk): for very large, ~5%-dense graphs, add scalar-prefetched block
    # nonzero tables to skip all-zero (tile_m, tile_k) adjacency blocks.


# -------------------------- graph / param setup ------------------------------

def sym_normalize_adj(adj_np):
    """pre_adj: D^-1/2 (A + I) D^-1/2 (dense, float32)."""
    a = adj_np + np.eye(adj_np.shape[0], dtype=np.float32)
    rowsum = a.sum(1)
    d_inv_sqrt = np.power(rowsum, -0.5)
    d_inv_sqrt[np.isinf(d_inv_sqrt)] = 0.0
    d = np.diag(d_inv_sqrt)
    return (d @ a @ d).astype(np.float32)


# ---------------------------------- main -------------------------------------

if __name__ == "__main__":
    N, IN_FEATS, OUT_FEATS = 128, 32, 64

    key = jax.random.PRNGKey(0)
    k_adj, k_feat, k_w = jax.random.split(key, 3)

    # Deterministic synthetic undirected graph (~5% density).
    adj_raw = (jax.random.uniform(k_adj, (N, N)) < 0.05).astype(jnp.float32)
    adj_raw = np.asarray(adj_raw)
    adj_raw = np.maximum(adj_raw, adj_raw.T)          # symmetrize
    np.fill_diagonal(adj_raw, 0.0)
    adj_norm = jnp.asarray(sym_normalize_adj(adj_raw))

    # Node features and layer weight (nn.Parameter(torch.randn(in, out))).
    feat = jax.random.normal(k_feat, (N, IN_FEATS), dtype=jnp.float32)
    W = jax.random.normal(k_w, (IN_FEATS, OUT_FEATS), dtype=jnp.float32)

    out = simple_conv(adj_norm, feat, W)
    out = jax.block_until_ready(out)

    # Pure-JAX reference check (original association order).
    ref = jnp.maximum(adj_norm @ (feat @ W), 0.0)
    np.testing.assert_allclose(np.asarray(out), np.asarray(ref),
                               rtol=1e-5, atol=1e-5)

    print("KERNEL_OK")
</pallas_src>

<mosaic_0001>
module attributes {stable_mosaic.version = 11 : i64} {
  func.func @_fused_gcn_kernel(%arg0: i32, %arg1: i32, %arg2: memref<128x128xf32, #tpu.memory_space<vmem>>, %arg3: memref<128x32xf32, #tpu.memory_space<vmem>>, %arg4: memref<32x64xf32, #tpu.memory_space<vmem>>, %arg5: memref<128x64xf32, #tpu.memory_space<vmem>>, %arg6: memref<128x32xf32, #tpu.memory_space<vmem>>) attributes {dimension_semantics = [#tpu.dimension_semantics<parallel>, #tpu.dimension_semantics<arbitrary>], iteration_bounds = array<i64: 1, 1>, scalar_prefetch = 0 : i64, scratch_operands = 1 : i64, tpu.core_type = #tpu.core_type<tc>, window_params = [{transform_indices = @transform_0, window_bounds = array<i64: 128, 128>}, {transform_indices = @transform_1, window_bounds = array<i64: 128, 32>}, {pipeline_mode = #tpu.pipeline_mode<synchronous>, transform_indices = @transform_2, window_bounds = array<i64: 32, 64>}, {transform_indices = @transform_3, window_bounds = array<i64: 128, 64>}]} {
    %c0_i32 = arith.constant 0 : i32
    %0 = arith.cmpi eq, %arg1, %c0_i32 : i32
    %1 = arith.extui %0 : i1 to i32
    %c0_i32_0 = arith.constant 0 : i32
    %2 = arith.cmpi ne, %1, %c0_i32_0 : i32
    scf.if %2 {
      %cst_10 = arith.constant 0.000000e+00 : f32
      %12 = vector.broadcast %cst_10 : f32 to vector<128x32xf32>
      %c0_11 = arith.constant 0 : index
      %c0_12 = arith.constant 0 : index
      %13 = vector.load %arg6[%c0_11, %c0_12] : memref<128x32xf32, #tpu.memory_space<vmem>>, vector<128x32xf32>
      tpu.vector_store %arg6[%c0_11, %c0_12], %12 {strides = array<i32>} : memref<128x32xf32, #tpu.memory_space<vmem>>, vector<128x32xf32>,
    } else {
    }
    %c0 = arith.constant 0 : index
    %c0_1 = arith.constant 0 : index
    %3 = vector.load %arg6[%c0, %c0_1] : memref<128x32xf32, #tpu.memory_space<vmem>>, vector<128x32xf32>
    %c0_2 = arith.constant 0 : index
    %c0_3 = arith.constant 0 : index
    %4 = vector.load %arg2[%c0_2, %c0_3] : memref<128x128xf32, #tpu.memory_space<vmem>>, vector<128x128xf32>
    %c0_4 = arith.constant 0 : index
    %c0_5 = arith.constant 0 : index
    %5 = vector.load %arg3[%c0_4, %c0_5] : memref<128x32xf32, #tpu.memory_space<vmem>>, vector<128x32xf32>
    %cst = arith.constant dense<0.000000e+00> : vector<128x32xf32>
    %6 = tpu.matmul %4, %5, %cst {dimension_numbers = #tpu.dot_dimension_numbers<[1], [0], [0], [1], [0, 0, 1, 1], [], []>} : vector<128x128xf32>, vector<128x32xf32>, vector<128x32xf32> -> vector<128x32xf32>
    %7 = arith.addf %3, %6 : vector<128x32xf32>
    %c0_6 = arith.constant 0 : index
    %c0_7 = arith.constant 0 : index
    %8 = vector.load %arg6[%c0_6, %c0_7] : memref<128x32xf32, #tpu.memory_space<vmem>>, vector<128x32xf32>
    tpu.vector_store %arg6[%c0_6, %c0_7], %7 {strides = array<i32>} : memref<128x32xf32, #tpu.memory_space<vmem>>, vector<128x32xf32>,
    %c0_i32_8 = arith.constant 0 : i32
    %9 = arith.cmpi eq, %arg1, %c0_i32_8 : i32
    %10 = arith.extui %9 : i1 to i32
    %c0_i32_9 = arith.constant 0 : i32
    %11 = arith.cmpi ne, %10, %c0_i32_9 : i32
    scf.if %11 {
      %c0_10 = arith.constant 0 : index
      %c0_11 = arith.constant 0 : index
      %12 = vector.load %arg6[%c0_10, %c0_11] : memref<128x32xf32, #tpu.memory_space<vmem>>, vector<128x32xf32>
      %c0_12 = arith.constant 0 : index
      %c0_13 = arith.constant 0 : index
      %13 = vector.load %arg4[%c0_12, %c0_13] : memref<32x64xf32, #tpu.memory_space<vmem>>, vector<32x64xf32>
      %cst_14 = arith.constant dense<0.000000e+00> : vector<128x64xf32>
      %14 = tpu.matmul %12, %13, %cst_14 {dimension_numbers = #tpu.dot_dimension_numbers<[1], [0], [0], [1], [0, 0, 1, 1], [], []>} : vector<128x32xf32>, vector<32x64xf32>, vector<128x64xf32> -> vector<128x64xf32>
      %cst_15 = arith.constant 0.000000e+00 : f32
      %15 = vector.broadcast %cst_15 : f32 to vector<128x64xf32>
      %16 = arith.maximumf %14, %15 : vector<128x64xf32>
      %c0_16 = arith.constant 0 : index
      %c0_17 = arith.constant 0 : index
      %17 = vector.load %arg5[%c0_16, %c0_17] : memref<128x64xf32, #tpu.memory_space<vmem>>, vector<128x64xf32>
      tpu.vector_store %arg5[%c0_16, %c0_17], %16 {strides = array<i32>} : memref<128x64xf32, #tpu.memory_space<vmem>>, vector<128x64xf32>,
    } else {
    }
    return
  }
  func.func @transform_0(%arg0: i32, %arg1: i32) -> (i32, i32) {
    %c0_i32 = arith.constant 0 : i32
    return %arg0, %arg1 : i32, i32
  }
  func.func @transform_1(%arg0: i32, %arg1: i32) -> (i32, i32) {
    %c0_i32 = arith.constant 0 : i32
    %c0_i32_0 = arith.constant 0 : i32
    return %arg1, %c0_i32 : i32, i32
  }
  func.func @transform_2(%arg0: i32, %arg1: i32) -> (i32, i32) {
    %c0_i32 = arith.constant 0 : i32
    %c0_i32_0 = arith.constant 0 : i32
    %c0_i32_1 = arith.constant 0 : i32
    return %c0_i32, %c0_i32_0 : i32, i32
  }
  func.func @transform_3(%arg0: i32, %arg1: i32) -> (i32, i32) {
    %c0_i32 = arith.constant 0 : i32
    %c0_i32_0 = arith.constant 0 : i32
    return %arg0, %c0_i32 : i32, i32
  }
}

</mosaic_0001>

<bundles_post_ra>
// kernel: tpu_custom_call.1
= control target key start
LH: loop header
LB: loop body
LE: loop exit
PB: predicated region body
PF: predicated region fallthrough
CT: control target
= control target key end

     0   :  { %vm18_vm0 = vcmask 261120   ;;  %v407_v25 = vmov 0.0   ;;  %vm333_vm1 = vcmask 523264   ;;  %s648_s1 = inlined_call_operand.vmem [shape: f32[128,32], index: 1, kind: input, shape index: {}]   ;;  %s649_s0 = inlined_call_operand.vmem [shape: f32[128,128], index: 0, kind: input, shape index: {}]   ;;  %s650_s2 = inlined_call_operand.vmem [shape: f32[32,64], index: 2, kind: input, shape index: {}]   ;;  %s651_s3 = inlined_call_operand.vmem [shape: f32[128,64], index: 3, kind: output, shape index: {}]  }
   0x1   :  { %v82_v0 = vld [vmem:[%s648_s1 + $0x78] sm:$0xff]  ;;  %v81_v1 = vld [vmem:[%s648_s1 + $0x70] sm:$0xff]  ;;  %v80_v2 = vld [vmem:[%s648_s1 + $0x68] sm:$0xff]  ;;  %19 = vst.msk [vmem:[#allocation2] sm:$0xff] %vm18_vm0, %v407_v25 }
   0x2   :  { %83 = vmatpush.msra.mxu0 %v82_v0  ;;  %370 = vmatpush.msra.mxu2 %v82_v0  ;;  %v79_v3 = vld [vmem:[%s648_s1 + $0x60] sm:$0xff]  ;;  %v78_v4 = vld [vmem:[%s648_s1 + $0x58] sm:$0xff]  ;;  %v77_v5 = vld [vmem:[%s648_s1 + $0x50] sm:$0xff]  ;;  %20 = vst.msk [vmem:[#allocation2 + $0x8] sm:$0xff] %vm18_vm0, %v407_v25 }
   0x3   :  { %371 = vmatpush.msra.mxu3 %v82_v0  ;;  %v76_v6 = vld [vmem:[%s648_s1 + $0x48] sm:$0xff]  ;;  %v75_v7 = vld [vmem:[%s648_s1 + $0x40] sm:$0xff]  ;;  %v74_v8 = vld [vmem:[%s648_s1 + $0x38] sm:$0xff]  ;;  %21 = vst.msk [vmem:[#allocation2 + $0x10] sm:$0xff] %vm18_vm0, %v407_v25 }
   0x4   :  { %84 = vmatpush.msra.mxu0 %v81_v1  ;;  %372 = vmatpush.msra.mxu2 %v81_v1  ;;  %v73_v9 = vld [vmem:[%s648_s1 + $0x30] sm:$0xff]  ;;  %v72_v10 = vld [vmem:[%s648_s1 + $0x28] sm:$0xff]  ;;  %v71_v11 = vld [vmem:[%s648_s1 + $0x20] sm:$0xff]  ;;  %22 = vst.msk [vmem:[#allocation2 + $0x18] sm:$0xff] %vm18_vm0, %v407_v25 }
   0x5   :  { %373 = vmatpush.msra.mxu3 %v81_v1  ;;  %v70_v12 = vld [vmem:[%s648_s1 + $0x18] sm:$0xff]  ;;  %v69_v13 = vld [vmem:[%s648_s1 + $0x10] sm:$0xff]  ;;  %v68_v14 = vld [vmem:[%s648_s1 + $0x8] sm:$0xff]  ;;  %23 = vst.msk [vmem:[#allocation2 + $0x20] sm:$0xff] %vm18_vm0, %v407_v25 }
   0x6   :  { %85 = vmatpush.msra.mxu0 %v80_v2  ;;  %374 = vmatpush.msra.mxu2 %v80_v2  ;;  %v67_v15 = vld [vmem:[%s648_s1] sm:$0xff]  ;;  %v58_v17 = vld [vmem:[%s649_s0 + $0x38] sm:$0xff]  ;;  %v52_v18 = vld [vmem:[%s649_s0 + $0x8] sm:$0xff]  ;;  %24 = vst.msk [vmem:[#allocation2 + $0x28] sm:$0xff] %vm18_vm0, %v407_v25 }
   0x7   :  { %375 = vmatpush.msra.mxu3 %v80_v2  ;;  %v51_v16 = vld [vmem:[%s649_s0] sm:$0xff]  ;;  %v53_v20 = vld [vmem:[%s649_s0 + $0x10] sm:$0xff]  ;;  %v60_v21 = vld [vmem:[%s649_s0 + $0x48] sm:$0xff]  ;;  %25 = vst.msk [vmem:[#allocation2 + $0x30] sm:$0xff] %vm18_vm0, %v407_v25 }
   0x8   :  { %86 = vmatpush.msra.mxu0 %v79_v3  ;;  %376 = vmatpush.msra.mxu2 %v79_v3  ;;  %v59_v19 = vld [vmem:[%s649_s0 + $0x40] sm:$0xff]  ;;  %v54_v22 = vld [vmem:[%s649_s0 + $0x18] sm:$0xff]  ;;  %v61_v23 = vld [vmem:[%s649_s0 + $0x50] sm:$0xff]  ;;  %26 = vst.msk [vmem:[#allocation2 + $0x38] sm:$0xff] %vm18_vm0, %v407_v25 }
   0x9   :  { %377 = vmatpush.msra.mxu3 %v79_v3  ;;  %v66_v24 = vld [vmem:[%s649_s0 + $0x78] sm:$0xff]  ;;  %v55_v26 = vld [vmem:[%s649_s0 + $0x20] sm:$0xff]  ;;  %27 = vst.msk [vmem:[#allocation2 + $0x40] sm:$0xff] %vm18_vm0, %v407_v25  ;;  %v56_v28 = vld [vmem:[%s649_s0 + $0x28] sm:$0xff] }
   0xa   :  { %87 = vmatpush.msra.mxu0 %v78_v4  ;;  %378 = vmatpush.msra.mxu2 %v78_v4  ;;  %v62_v27 = vld [vmem:[%s649_s0 + $0x58] sm:$0xff]  ;;  %28 = vst.msk [vmem:[#allocation2 + $0x48] sm:$0xff] %vm18_vm0, %v407_v25  ;;  %v63_v29 = vld [vmem:[%s649_s0 + $0x60] sm:$0xff]  ;;  %v57_v30 = vld [vmem:[%s649_s0 + $0x30] sm:$0xff] }
   0xb   :  { %379 = vmatpush.msra.mxu3 %v78_v4  ;;  %29 = vst.msk [vmem:[#allocation2 + $0x50] sm:$0xff] %vm18_vm0, %v407_v25  ;;  %v64_v31 = vld [vmem:[%s649_s0 + $0x68] sm:$0xff]  ;;  %v65_v32 = vld [vmem:[%s649_s0 + $0x70] sm:$0xff]  ;;  %v203_v33 = vld [vmem:[%s650_s2 + $0x18] sm:$0xff] }
   0xc   :  { %88 = vmatpush.msra.mxu0 %v77_v5  ;;  %380 = vmatpush.msra.mxu2 %v77_v5  ;;  %30 = vst.msk [vmem:[#allocation2 + $0x58] sm:$0xff] %vm18_vm0, %v407_v25  ;;  %v202_v34 = vld [vmem:[%s650_s2 + $0x10] sm:$0xff]  ;;  %v201_v35 = vld [vmem:[%s650_s2 + $0x8] sm:$0xff]  ;;  %v200_v36 = vld [vmem:[%s650_s2] sm:$0xff] }
   0xd   :  { %381 = vmatpush.msra.mxu3 %v77_v5  ;;  %31 = vst.msk [vmem:[#allocation2 + $0x60] sm:$0xff] %vm18_vm0, %v407_v25  ;;  %264 = vmatpush.msra.mxu1 %v203_v33  ;;  %v35_v37 = vld [vmem:[#allocation2] sm:$0xff]  ;;  %v36_v42 = vld [vmem:[#allocation2 + $0x8] sm:$0xff]  ;;  %v37_v49 = vld [vmem:[#allocation2 + $0x10] sm:$0xff] }
   0xe   :  { %89 = vmatpush.msra.mxu0 %v76_v6  ;;  %382 = vmatpush.msra.mxu2 %v76_v6  ;;  %32 = vst.msk [vmem:[#allocation2 + $0x68] sm:$0xff] %vm18_vm0, %v407_v25  ;;  %v38_v56 = vld [vmem:[#allocation2 + $0x18] sm:$0xff]  ;;  %v39_v63 = vld [vmem:[#allocation2 + $0x20] sm:$0xff] }
   0xf   :  { %383 = vmatpush.msra.mxu3 %v76_v6  ;;  %33 = vst.msk [vmem:[#allocation2 + $0x70] sm:$0xff] %vm18_vm0, %v407_v25  ;;  %265 = vmatpush.msra.mxu1 %v202_v34  ;;  %v42_v40 = vld [vmem:[#allocation2 + $0x38] sm:$0xff] }
  0x10   :  { %90 = vmatpush.msra.mxu0 %v75_v7  ;;  %384 = vmatpush.msra.mxu2 %v75_v7  ;;  %34 = vst.msk [vmem:[#allocation2 + $0x78] sm:$0xff] %vm18_vm0, %v407_v25  ;;  %v43_v47 = vld [vmem:[#allocation2 + $0x40] sm:$0xff] }
  0x11   :  { %385 = vmatpush.msra.mxu3 %v75_v7  ;;  %266 = vmatpush.msra.mxu1 %v201_v35  ;;  %v44_v54 = vld [vmem:[#allocation2 + $0x48] sm:$0xff] }
  0x12   :  { %91 = vmatpush.msra.mxu0 %v74_v8  ;;  %386 = vmatpush.msra.mxu2 %v74_v8  ;;  %v45_v61 = vld [vmem:[#allocation2 + $0x50] sm:$0xff] }
  0x13   :  { %387 = vmatpush.msra.mxu3 %v74_v8  ;;  %267 = vmatpush.msra.mxu1 %v200_v36  ;;  %v46_v6 = vld [vmem:[#allocation2 + $0x58] sm:$0xff] }
  0x14   :  { %92 = vmatpush.msra.mxu0 %v73_v9  ;;  %388 = vmatpush.msra.mxu2 %v73_v9 }
  0x15   :  { %389 = vmatpush.msra.mxu3 %v73_v9  ;;  %v40_v9 = vld [vmem:[#allocation2 + $0x28] sm:$0xff] }
  0x16   :  { %93 = vmatpush.msra.mxu0 %v72_v10  ;;  %390 = vmatpush.msra.mxu2 %v72_v10 }
  0x17   :  { %391 = vmatpush.msra.mxu3 %v72_v10  ;;  %v50_v4 = vld [vmem:[#allocation2 + $0x78] sm:$0xff] }
  0x18   :  { %94 = vmatpush.msra.mxu0 %v71_v11  ;;  %392 = vmatpush.msra.mxu2 %v71_v11 }
  0x19   :  { %393 = vmatpush.msra.mxu3 %v71_v11 }
  0x1a   :  { %95 = vmatpush.msra.mxu0 %v70_v12  ;;  %394 = vmatpush.msra.mxu2 %v70_v12 }
  0x1b   :  { %395 = vmatpush.msra.mxu3 %v70_v12 }
  0x1c   :  { %96 = vmatpush.msra.mxu0 %v69_v13  ;;  %396 = vmatpush.msra.mxu2 %v69_v13 }
  0x1d   :  { %397 = vmatpush.msra.mxu3 %v69_v13 }
  0x1e   :  { %97 = vmatpush.msra.mxu0 %v68_v14  ;;  %398 = vmatpush.msra.mxu2 %v68_v14 }
  0x1f   :  { %399 = vmatpush.msra.mxu3 %v68_v14 }
  0x20   :  { %98 = vmatpush.msra.mxu0 %v67_v15  ;;  %400 = vmatpush.msra.mxu2 %v67_v15 }
  0x21   :  { %99 = vmatmul.f32.vlgmr.msra.gmra.mxu0 %v51_v16  ;;  %120 = vmatmul.f32.vlgmr.msra.gmra.mxu2 %v58_v17  ;;  %v41_v17 = vld [vmem:[#allocation2 + $0x30] sm:$0xff] }
  0x22   :  { %401 = vmatpush.msra.mxu3 %v67_v15  ;;  %v47_v15 = vld [vmem:[#allocation2 + $0x60] sm:$0xff] }
  0x23   :  { %144 = vmatmul.f32.vlgmr.msra.gmra.mxu3 %v66_v24 }
  0x24   :  { %402 = vmatpush.msrb.mxu3 %v203_v33 }
  0x26   :  { %403 = vmatpush.msrb.mxu3 %v202_v34 }
  0x28   :  { %404 = vmatpush.msrb.mxu3 %v201_v35 }
  0x29   :  { %102 = vmatmul.f32.gmra.mxu0 %v52_v18  ;;  %123 = vmatmul.f32.gmra.mxu2 %v59_v19 }
  0x2a   :  { %405 = vmatpush.msrb.mxu3 %v200_v36 }
  0x31   :  { %105 = vmatmul.f32.gmra.mxu0 %v53_v20  ;;  %126 = vmatmul.f32.gmra.mxu2 %v60_v21 }
  0x39   :  { %108 = vmatmul.f32.gmra.mxu0 %v54_v22  ;;  %129 = vmatmul.f32.gmra.mxu2 %v61_v23  ;;  %v48_v23 = vld [vmem:[#allocation2 + $0x68] sm:$0xff] }
  0x41   :  { %111 = vmatmul.f32.gmra.mxu0 %v55_v26  ;;  %132 = vmatmul.f32.gmra.mxu2 %v62_v27 }
  0x49   :  { %114 = vmatmul.f32.gmra.mxu0 %v56_v28  ;;  %135 = vmatmul.f32.gmra.mxu2 %v63_v29  ;;  %v49_v28 = vld [vmem:[#allocation2 + $0x70] sm:$0xff] }
  0x51   :  { %117 = vmatmul.f32.gmra.mxu0 %v57_v30  ;;  %138 = vmatmul.f32.gmra.mxu2 %v64_v31 }
  0x59   :  { %141 = vmatmul.f32.gmra.mxu2 %v65_v32 }
  0x9e   :  { %v100_v38 = vpop.f32.mrf.mxu0 }
  0x9f   :  { %v148_v39 = vadd.f32 %v100_v38, %v35_v37 }
  0xa1   :  { %165 = vst.msk [vmem:[#allocation2] sm:$0xff] %vm18_vm0, %v148_v39 }
  0xa4   :  { %v121_v41 = vpop.f32.mrf.mxu2 }
  0xa5   :  { %v155_v43 = vadd.f32 %v121_v41, %v42_v40 }
  0xa6   :  { %v103_v44 = vpop.f32.mrf.mxu0  ;;  %v145_v5 = vpop.f32.mrf.mxu3 }
  0xa7   :  { %172 = vst.msk [vmem:[#allocation2 + $0x38] sm:$0xff] %vm18_vm0, %v155_v43  ;;  %v149_v45 = vadd.f32 %v103_v44, %v36_v42  ;;  %v163_v7 = vadd.f32 %v145_v5, %v50_v4 }
  0xa8   :  { %v184_v46 = vld [vmem:[#allocation2] sm:$0xff] }
  0xa9   :  { %166 = vst.msk [vmem:[#allocation2 + $0x8] sm:$0xff] %vm18_vm0, %v149_v45  ;;  %354 = vmatmul.msk.f32.vlgmr.msra.gmra.mxu1 %vm18_vm0, %v184_v46 }
  0xaa   :  { %180 = vst.msk [vmem:[#allocation2 + $0x78] sm:$0xff] %vm18_vm0, %v163_v7 }
  0xac   :  { %v124_v48 = vpop.f32.mrf.mxu2 }
  0xad   :  { %v156_v50 = vadd.f32 %v124_v48, %v43_v47 }
  0xae   :  { %v106_v51 = vpop.f32.mrf.mxu0  ;;  %v191_v32 = vld [vmem:[#allocation2 + $0x38] sm:$0xff] }
  0xaf   :  { %173 = vst.msk [vmem:[#allocation2 + $0x40] sm:$0xff] %vm18_vm0, %v156_v50  ;;  %v150_v52 = vadd.f32 %v106_v51, %v37_v49 }
  0xb0   :  { %v185_v53 = vld [vmem:[#allocation2 + $0x8] sm:$0xff] }
  0xb1   :  { %167 = vst.msk [vmem:[#allocation2 + $0x10] sm:$0xff] %vm18_vm0, %v150_v52  ;;  %355 = vmatmul.msk.f32.gmra.mxu1 %vm18_vm0, %v185_v53  ;;  %v199_v35 = vld [vmem:[#allocation2 + $0x78] sm:$0xff] }
  0xb4   :  { %v127_v55 = vpop.f32.mrf.mxu2 }
  0xb5   :  { %v157_v57 = vadd.f32 %v127_v55, %v44_v54 }
  0xb6   :  { %v109_v58 = vpop.f32.mrf.mxu0  ;;  %v192_v34 = vld [vmem:[#allocation2 + $0x40] sm:$0xff] }
  0xb7   :  { %174 = vst.msk [vmem:[#allocation2 + $0x48] sm:$0xff] %vm18_vm0, %v157_v57  ;;  %v151_v59 = vadd.f32 %v109_v58, %v38_v56 }
  0xb8   :  { %v186_v60 = vld [vmem:[#allocation2 + $0x10] sm:$0xff] }
  0xb9   :  { %168 = vst.msk [vmem:[#allocation2 + $0x18] sm:$0xff] %vm18_vm0, %v151_v59  ;;  %356 = vmatmul.msk.f32.gmra.mxu1 %vm18_vm0, %v186_v60 }
  0xbc   :  { %v130_v62 = vpop.f32.mrf.mxu2 }
  0xbd   :  { %v158_v0 = vadd.f32 %v130_v62, %v45_v61 }
  0xbe   :  { %v112_v1 = vpop.f32.mrf.mxu0  ;;  %v193_v36 = vld [vmem:[#allocation2 + $0x48] sm:$0xff] }
  0xbf   :  { %175 = vst.msk [vmem:[#allocation2 + $0x50] sm:$0xff] %vm18_vm0, %v158_v0  ;;  %v152_v2 = vadd.f32 %v112_v1, %v39_v63 }
  0xc0   :  { %v187_v3 = vld [vmem:[#allocation2 + $0x18] sm:$0xff] }
  0xc1   :  { %169 = vst.msk [vmem:[#allocation2 + $0x20] sm:$0xff] %vm18_vm0, %v152_v2  ;;  %357 = vmatmul.msk.f32.gmra.mxu1 %vm18_vm0, %v187_v3 }
  0xc4   :  { %v133_v8 = vpop.f32.mrf.mxu2 }
  0xc5   :  { %v159_v10 = vadd.f32 %v133_v8, %v46_v6 }
  0xc6   :  { %v115_v11 = vpop.f32.mrf.mxu0  ;;  %v194_v12 = vld [vmem:[#allocation2 + $0x50] sm:$0xff] }
  0xc7   :  { %176 = vst.msk [vmem:[#allocation2 + $0x58] sm:$0xff] %vm18_vm0, %v159_v10  ;;  %v153_v13 = vadd.f32 %v115_v11, %v40_v9  ;;  %364 = vmatmul.msk.f32.vlgmr.msrb.gmra.mxu3 %vm18_vm0, %v194_v12 }
  0xc8   :  { %v188_v14 = vld [vmem:[#allocation2 + $0x20] sm:$0xff] }
  0xc9   :  { %170 = vst.msk [vmem:[#allocation2 + $0x28] sm:$0xff] %vm18_vm0, %v153_v13  ;;  %358 = vmatmul.msk.f32.gmra.mxu1 %vm18_vm0, %v188_v14 }
  0xcc   :  { %v136_v16 = vpop.f32.mrf.mxu2 }
  0xcd   :  { %v160_v18 = vadd.f32 %v136_v16, %v47_v15 }
  0xce   :  { %v118_v19 = vpop.f32.mrf.mxu0  ;;  %v195_v20 = vld [vmem:[#allocation2 + $0x58] sm:$0xff] }
  0xcf   :  { %177 = vst.msk [vmem:[#allocation2 + $0x60] sm:$0xff] %vm18_vm0, %v160_v18  ;;  %v154_v21 = vadd.f32 %v118_v19, %v41_v17  ;;  %365 = vmatmul.msk.f32.gmra.mxu3 %vm18_vm0, %v195_v20 }
  0xd0   :  { %v189_v22 = vld [vmem:[#allocation2 + $0x28] sm:$0xff] }
  0xd1   :  { %171 = vst.msk [vmem:[#allocation2 + $0x30] sm:$0xff] %vm18_vm0, %v154_v21  ;;  %359 = vmatmul.msk.f32.gmra.mxu1 %vm18_vm0, %v189_v22 }
  0xd4   :  { %v139_v24 = vpop.f32.mrf.mxu2 }
  0xd5   :  { %v161_v25 = vadd.f32 %v139_v24, %v48_v23 }
  0xd6   :  { %v196_v26 = vld [vmem:[#allocation2 + $0x60] sm:$0xff] }
  0xd7   :  { %178 = vst.msk [vmem:[#allocation2 + $0x68] sm:$0xff] %vm18_vm0, %v161_v25  ;;  %366 = vmatmul.msk.f32.gmra.mxu3 %vm18_vm0, %v196_v26 }
  0xd8   :  { %v190_v27 = vld [vmem:[#allocation2 + $0x30] sm:$0xff] }
  0xd9   :  { %360 = vmatmul.msk.f32.gmra.mxu1 %vm18_vm0, %v190_v27 }
  0xdc   :  { %v142_v29 = vpop.f32.mrf.mxu2 }
  0xdd   :  { %v162_v30 = vadd.f32 %v142_v29, %v49_v28 }
  0xde   :  { %v197_v31 = vld [vmem:[#allocation2 + $0x68] sm:$0xff] }
  0xdf   :  { %179 = vst.msk [vmem:[#allocation2 + $0x70] sm:$0xff] %vm18_vm0, %v162_v30  ;;  %367 = vmatmul.msk.f32.gmra.mxu3 %vm18_vm0, %v197_v31 }
  0xe1   :  { %361 = vmatmul.msk.f32.gmra.mxu1 %vm18_vm0, %v191_v32 }
  0xe6   :  { %v198_v33 = vld [vmem:[#allocation2 + $0x70] sm:$0xff] }
  0xe7   :  { %368 = vmatmul.msk.f32.gmra.mxu3 %vm18_vm0, %v198_v33 }
  0xe9   :  { %362 = vmatmul.msk.f32.gmra.mxu1 %vm18_vm0, %v192_v34 }
  0xef   :  { %369 = vmatmul.msk.f32.gmra.mxu3 %vm18_vm0, %v199_v35 }
  0xf1   :  { %363 = vmatmul.msk.f32.gmra.mxu1 %vm18_vm0, %v193_v36 }
 0x126   :  { %v269_v37 = vpop.f32.mrf.mxu1 }
 0x127   :  { %v317_v38 = vmax.f32 %v269_v37, 0.0 }
 0x129   :  { %334 = vst.msk [vmem:[%s651_s3] sm:$0xff] %vm333_vm1, %v317_v38 }
 0x12e   :  { %v272_v39 = vpop.f32.mrf.mxu1 }
 0x12f   :  { %v318_v40 = vmax.f32 %v272_v39, 0.0 }
 0x131   :  { %335 = vst.msk [vmem:[%s651_s3 + $0x8] sm:$0xff] %vm333_vm1, %v318_v40 }
 0x136   :  { %v275_v41 = vpop.f32.mrf.mxu1 }
 0x137   :  { %v319_v42 = vmax.f32 %v275_v41, 0.0 }
 0x139   :  { %336 = vst.msk [vmem:[%s651_s3 + $0x10] sm:$0xff] %vm333_vm1, %v319_v42 }
 0x13e   :  { %v278_v43 = vpop.f32.mrf.mxu1 }
 0x13f   :  { %v320_v44 = vmax.f32 %v278_v43, 0.0 }
 0x141   :  { %337 = vst.msk [vmem:[%s651_s3 + $0x18] sm:$0xff] %vm333_vm1, %v320_v44 }
 0x146   :  { %v281_v45 = vpop.f32.mrf.mxu1 }
 0x147   :  { %v321_v46 = vmax.f32 %v281_v45, 0.0 }
 0x149   :  { %338 = vst.msk [vmem:[%s651_s3 + $0x20] sm:$0xff] %vm333_vm1, %v321_v46 }
 0x14a   :  { %v299_v47 = vpop.f32.mrf.mxu3 }
 0x14b   :  { %v327_v48 = vmax.f32 %v299_v47, 0.0 }
 0x14d   :  { %344 = vst.msk [vmem:[%s651_s3 + $0x50] sm:$0xff] %vm333_vm1, %v327_v48 }
 0x14e   :  { %v284_v49 = vpop.f32.mrf.mxu1 }
 0x14f   :  { %v322_v50 = vmax.f32 %v284_v49, 0.0 }
 0x151   :  { %339 = vst.msk [vmem:[%s651_s3 + $0x28] sm:$0xff] %vm333_vm1, %v322_v50 }
 0x152   :  { %v302_v51 = vpop.f32.mrf.mxu3 }
 0x153   :  { %v328_v52 = vmax.f32 %v302_v51, 0.0 }
 0x155   :  { %345 = vst.msk [vmem:[%s651_s3 + $0x58] sm:$0xff] %vm333_vm1, %v328_v52 }
 0x156   :  { %v287_v53 = vpop.f32.mrf.mxu1 }
 0x157   :  { %v323_v54 = vmax.f32 %v287_v53, 0.0 }
 0x159   :  { %340 = vst.msk [vmem:[%s651_s3 + $0x30] sm:$0xff] %vm333_vm1, %v323_v54 }
 0x15a   :  { %v305_v55 = vpop.f32.mrf.mxu3 }
 0x15b   :  { %v329_v56 = vmax.f32 %v305_v55, 0.0 }
 0x15d   :  { %346 = vst.msk [vmem:[%s651_s3 + $0x60] sm:$0xff] %vm333_vm1, %v329_v56 }
 0x15e   :  { %v290_v57 = vpop.f32.mrf.mxu1 }
 0x15f   :  { %v324_v58 = vmax.f32 %v290_v57, 0.0 }
 0x161   :  { %341 = vst.msk [vmem:[%s651_s3 + $0x38] sm:$0xff] %vm333_vm1, %v324_v58 }
 0x162   :  { %v308_v59 = vpop.f32.mrf.mxu3 }
 0x163   :  { %v330_v60 = vmax.f32 %v308_v59, 0.0 }
 0x165   :  { %347 = vst.msk [vmem:[%s651_s3 + $0x68] sm:$0xff] %vm333_vm1, %v330_v60 }
 0x166   :  { %v293_v61 = vpop.f32.mrf.mxu1 }
 0x167   :  { %v325_v62 = vmax.f32 %v293_v61, 0.0 }
 0x169   :  { %342 = vst.msk [vmem:[%s651_s3 + $0x40] sm:$0xff] %vm333_vm1, %v325_v62 }
 0x16a   :  { %v311_v63 = vpop.f32.mrf.mxu3 }
 0x16b   :  { %v331_v0 = vmax.f32 %v311_v63, 0.0 }
 0x16d   :  { %348 = vst.msk [vmem:[%s651_s3 + $0x70] sm:$0xff] %vm333_vm1, %v331_v0 }
 0x16e   :  { %v296_v1 = vpop.f32.mrf.mxu1 }
 0x16f   :  { %v326_v2 = vmax.f32 %v296_v1, 0.0 }
 0x171   :  { %343 = vst.msk [vmem:[%s651_s3 + $0x48] sm:$0xff] %vm333_vm1, %v326_v2 }
 0x172   :  { %v314_v3 = vpop.f32.mrf.mxu3 }
 0x173   :  { %v332_v4 = vmax.f32 %v314_v3, 0.0 }
 0x175   :  { %349 = vst.msk [vmem:[%s651_s3 + $0x78] sm:$0xff] %vm333_vm1, %v332_v4 }

</bundles_post_ra>
